<compile_context>
chip_gen: v7x
topology: tpu7x:2x2x1
jax: 0.10.0
libtpu: 0.0.40
codegen_flags: <defaults>
</compile_context>

<pallas_src>
import numpy as np
import jax
import jax.numpy as jnp
from jax.experimental import pallas as pl
from jax.experimental.pallas import tpu as pltpu

# Deterministic blur weights (module buffer f = [1, 2, 1]; normalized outer product)
_F = np.array([1.0, 2.0, 1.0], dtype=np.float32)
_K = np.outer(_F, _F)
_K = _K / _K.sum()                      # [[1,2,1],[2,4,2],[1,2,1]] / 16
_KW = [[float(_K[i, j]) for j in range(3)] for i in range(3)]

_BLOCK_BUDGET_BYTES = 4 << 20   # per input block; in+out double-buffered plus f32
                                # temps stays comfortably inside v7x's 64 MiB VMEM
_VMEM_LIMIT_BYTES = 40 << 20    # above v5e (16 MiB) / v6e (32 MiB) defaults,
                                # below every generation's physical VMEM


def _blur_kernel(x_ref, o_ref):
    """x_ref, o_ref: (H, W, Pblk) with planes on lanes.

    Separable [1,2,1]/4 blur along H then W, with the reflect(1) halo built
    in-kernel (no pre-padded input). Accumulates in f32, casts back on store.
    """
    x = x_ref[...].astype(jnp.float32)
    H, W = x.shape[0], x.shape[1]

    # Vertical pass: reflect halo along H (3rd-minor axis -> cheap vreg copies).
    xh = jnp.concatenate([x[1:2], x, x[H - 2:H - 1]], axis=0)            # (H+2, W, P)
    v = (xh[0:H] + 2.0 * xh[1:H + 1] + xh[2:H + 2]) * 0.25

    # Horizontal pass: reflect halo along W (sublane axis).
    vw = jnp.concatenate([v[:, 1:2], v, v[:, W - 2:W - 1]], axis=1)      # (H, W+2, P)
    out = (vw[:, 0:W] + 2.0 * vw[:, 1:W + 1] + vw[:, 2:W + 2]) * 0.25

    o_ref[...] = out.astype(o_ref.dtype)


def _choose_pblk(P, H, W, itemsize):
    """Lane-chunk size for the folded plane axis.

    Must be a multiple of 128 or equal to P (BlockSpec minormost rule). Sized
    to ~_BLOCK_BUDGET_BYTES per input block, and kept small enough that the
    grid has >= 2 steps when P allows it (v7x dual TensorCores).
    """
    if P < 256:
        return P  # single lane-dense block; covers small / test-sized inputs
    plane_bytes = H * W * itemsize
    by_budget = max(128, (_BLOCK_BUDGET_BYTES // plane_bytes) // 128 * 128)
    by_cores = max(128, (P // 2) // 128 * 128)
    return int(min(by_budget, by_cores))


def blur(x):
    """x: (N, C, H, W) -> (N, C, H, W); depthwise normalized 3x3 blur, reflect pad."""
    N, C, H, W = x.shape
    assert H >= 2 and W >= 2, "reflect padding requires spatial dims >= 2"
    P = N * C

    # Layout plumbing only: planes-last (H, W, N*C) puts the depthwise axis on
    # lanes. In a channels-last pipeline these transposes disappear entirely.
    xt = jnp.transpose(x.reshape(P, H, W), (1, 2, 0))

    pblk = _choose_pblk(P, H, W, jnp.dtype(x.dtype).itemsize)
    grid = (pl.cdiv(P, pblk),)  # partial trailing block is fine: no lane mixing

    out = pl.pallas_call(
        _blur_kernel,
        out_shape=jax.ShapeDtypeStruct((H, W, P), x.dtype),
        grid=grid,
        in_specs=[pl.BlockSpec((H, W, pblk), lambda p: (0, 0, p))],
        out_specs=pl.BlockSpec((H, W, pblk), lambda p: (0, 0, p)),
        compiler_params=pltpu.CompilerParams(
            dimension_semantics=("parallel",),
            vmem_limit_bytes=_VMEM_LIMIT_BYTES,
        ),
    )(xt)

    return jnp.transpose(out, (2, 0, 1)).reshape(N, C, H, W)


def _reference(x):
    # Pure-JAX reference: reflect pad + 3x3 weighted sum (matches kornia filter2D).
    N, C, H, W = x.shape
    xp = jnp.pad(x, ((0, 0), (0, 0), (1, 1), (1, 1)), mode="reflect").astype(jnp.float32)
    acc = jnp.zeros((N, C, H, W), jnp.float32)
    for di in range(3):
        for dj in range(3):
            acc = acc + _KW[di][dj] * xp[:, :, di:di + H, dj:dj + W]
    return acc.astype(x.dtype)


if __name__ == "__main__":
    key = jax.random.PRNGKey(0)
    x = jax.random.normal(key, (2, 4, 16, 16), dtype=jnp.float32)

    y = blur(x)
    jax.block_until_ready(y)

    y_ref = _reference(x)
    assert y.shape == x.shape
    np.testing.assert_allclose(np.asarray(y), np.asarray(y_ref), atol=1e-5, rtol=1e-5)

    print("KERNEL_OK")
</pallas_src>

<mosaic_0001>
module attributes {stable_mosaic.version = 11 : i64} {
  func.func @_blur_kernel(%arg0: i32, %arg1: memref<16x16x8xf32, #tpu.memory_space<vmem>>, %arg2: memref<16x16x8xf32, #tpu.memory_space<vmem>>) attributes {dimension_semantics = [#tpu.dimension_semantics<parallel>], iteration_bounds = array<i64: 1>, scalar_prefetch = 0 : i64, scratch_operands = 0 : i64, tpu.core_type = #tpu.core_type<tc>, window_params = [{transform_indices = @transform_0, window_bounds = array<i64: 16, 16, 8>}, {transform_indices = @transform_1, window_bounds = array<i64: 16, 16, 8>}]} {
    %c0 = arith.constant 0 : index
    %c0_0 = arith.constant 0 : index
    %c0_1 = arith.constant 0 : index
    %0 = vector.load %arg1[%c0, %c0_0, %c0_1] : memref<16x16x8xf32, #tpu.memory_space<vmem>>, vector<16x16x8xf32>
    %1 = vector.extract_strided_slice %0 {offsets = [1, 0, 0], sizes = [1, 16, 8], strides = [1, 1, 1]} : vector<16x16x8xf32> to vector<1x16x8xf32>
    %2 = vector.extract_strided_slice %0 {offsets = [14, 0, 0], sizes = [1, 16, 8], strides = [1, 1, 1]} : vector<16x16x8xf32> to vector<1x16x8xf32>
    %3 = tpu.concatenate %1, %0, %2 in 0 : vector<1x16x8xf32>, vector<16x16x8xf32>, vector<1x16x8xf32> -> vector<18x16x8xf32>
    %4 = vector.extract_strided_slice %3 {offsets = [0, 0, 0], sizes = [16, 16, 8], strides = [1, 1, 1]} : vector<18x16x8xf32> to vector<16x16x8xf32>
    %5 = vector.extract_strided_slice %3 {offsets = [1, 0, 0], sizes = [16, 16, 8], strides = [1, 1, 1]} : vector<18x16x8xf32> to vector<16x16x8xf32>
    %cst = arith.constant 2.000000e+00 : f32
    %6 = vector.broadcast %cst : f32 to vector<16x16x8xf32>
    %7 = arith.mulf %6, %5 : vector<16x16x8xf32>
    %8 = arith.addf %4, %7 : vector<16x16x8xf32>
    %9 = vector.extract_strided_slice %3 {offsets = [2, 0, 0], sizes = [16, 16, 8], strides = [1, 1, 1]} : vector<18x16x8xf32> to vector<16x16x8xf32>
    %10 = arith.addf %8, %9 : vector<16x16x8xf32>
    %cst_2 = arith.constant 2.500000e-01 : f32
    %11 = vector.broadcast %cst_2 : f32 to vector<16x16x8xf32>
    %12 = arith.mulf %10, %11 : vector<16x16x8xf32>
    %13 = vector.extract_strided_slice %12 {offsets = [0, 1, 0], sizes = [16, 1, 8], strides = [1, 1, 1]} : vector<16x16x8xf32> to vector<16x1x8xf32>
    %14 = vector.extract_strided_slice %12 {offsets = [0, 14, 0], sizes = [16, 1, 8], strides = [1, 1, 1]} : vector<16x16x8xf32> to vector<16x1x8xf32>
    %15 = tpu.concatenate %13, %12, %14 in 1 : vector<16x1x8xf32>, vector<16x16x8xf32>, vector<16x1x8xf32> -> vector<16x18x8xf32>
    %16 = vector.extract_strided_slice %15 {offsets = [0, 0, 0], sizes = [16, 16, 8], strides = [1, 1, 1]} : vector<16x18x8xf32> to vector<16x16x8xf32>
    %17 = vector.extract_strided_slice %15 {offsets = [0, 1, 0], sizes = [16, 16, 8], strides = [1, 1, 1]} : vector<16x18x8xf32> to vector<16x16x8xf32>
    %cst_3 = arith.constant 2.000000e+00 : f32
    %18 = vector.broadcast %cst_3 : f32 to vector<16x16x8xf32>
    %19 = arith.mulf %18, %17 : vector<16x16x8xf32>
    %20 = arith.addf %16, %19 : vector<16x16x8xf32>
    %21 = vector.extract_strided_slice %15 {offsets = [0, 2, 0], sizes = [16, 16, 8], strides = [1, 1, 1]} : vector<16x18x8xf32> to vector<16x16x8xf32>
    %22 = arith.addf %20, %21 : vector<16x16x8xf32>
    %cst_4 = arith.constant 2.500000e-01 : f32
    %23 = vector.broadcast %cst_4 : f32 to vector<16x16x8xf32>
    %24 = arith.mulf %22, %23 : vector<16x16x8xf32>
    %c0_5 = arith.constant 0 : index
    %c0_6 = arith.constant 0 : index
    %c0_7 = arith.constant 0 : index
    %25 = vector.load %arg2[%c0_5, %c0_6, %c0_7] : memref<16x16x8xf32, #tpu.memory_space<vmem>>, vector<16x16x8xf32>
    tpu.vector_store %arg2[%c0_5, %c0_6, %c0_7], %24 {strides = array<i32>} : memref<16x16x8xf32, #tpu.memory_space<vmem>>, vector<16x16x8xf32>,
    return
  }
  func.func @transform_0(%arg0: i32) -> (i32, i32, i32) {
    %c0_i32 = arith.constant 0 : i32
    %c0_i32_0 = arith.constant 0 : i32
    %c0_i32_1 = arith.constant 0 : i32
    return %c0_i32, %c0_i32_0, %arg0 : i32, i32, i32
  }
  func.func @transform_1(%arg0: i32) -> (i32, i32, i32) {
    %c0_i32 = arith.constant 0 : i32
    %c0_i32_0 = arith.constant 0 : i32
    %c0_i32_1 = arith.constant 0 : i32
    return %c0_i32, %c0_i32_0, %arg0 : i32, i32, i32
  }
}

</mosaic_0001>

<bundles_post_ra>
// kernel: tpu_custom_call.1
= control target key start
LH: loop header
LB: loop body
LE: loop exit
PB: predicated region body
PF: predicated region fallthrough
CT: control target
= control target key end

     0   :  { %vm232_vm0 = vcmask 1040384   ;;  %vm666_vm1 = vcmask 1045504   ;;  %vm489_vm2 = vcmask 1046528   ;;  %vm843_vm3 = vcmask 64512   ;;  %s1323_s0 = inlined_call_operand.vmem [shape: f32[16,16,8], index: 0, kind: input, shape index: {}]   ;;  %s1324_s1 = inlined_call_operand.vmem [shape: f32[16,16,8], index: 1, kind: output, shape index: {}]  }
   0x1   :  { %v8_v0 = vld [vmem:[%s1323_s0] sm:$0xff]  ;;  %v9_v1 = vld [vmem:[%s1323_s0 + $0x8] sm:$0xff]  ;;  %v10_v2 = vld [vmem:[%s1323_s0 + $0x10] sm:$0xff] }
   0x2   :  { %v11_v3 = vld [vmem:[%s1323_s0 + $0x18] sm:$0xff]  ;;  %v40_v4 = vmul.f32 2.0, %v8_v0  ;;  %v41_v5 = vmul.f32 2.0, %v9_v1  ;;  %v12_v6 = vld [vmem:[%s1323_s0 + $0x20] sm:$0xff]  ;;  %v13_v7 = vld [vmem:[%s1323_s0 + $0x28] sm:$0xff]  ;;  %v42_v8 = vmul.f32 2.0, %v10_v2 }
   0x3   :  { %v43_v9 = vmul.f32 2.0, %v11_v3  ;;  %v911_v10 = vld [vmem:[%s1323_s0 + $0x30] sm:$0xff]  ;;  %v916_v11 = vld [vmem:[%s1323_s0 + $0x38] sm:$0xff]  ;;  %v44_v12 = vmul.f32 2.0, %v12_v6  ;;  %v45_v13 = vmul.f32 2.0, %v13_v7  ;;  %v925_v29 = vld [vmem:[%s1323_s0 + $0x40] sm:$0xff] }
   0x4   :  { %v72_v14 = vadd.f32 %v40_v4, %v10_v2  ;;  %v73_v15 = vadd.f32 %v41_v5, %v11_v3  ;;  %v74_v16 = vadd.f32 %v42_v8, %v8_v0  ;;  %v46_v17 = vmul.f32 2.0, %v911_v10  ;;  %v930_v34 = vld [vmem:[%s1323_s0 + $0x48] sm:$0xff] }
   0x5   :  { %v75_v18 = vadd.f32 %v43_v9, %v9_v1  ;;  %v76_v19 = vadd.f32 %v44_v12, %v10_v2  ;;  %v77_v20 = vadd.f32 %v45_v13, %v11_v3  ;;  %v47_v21 = vmul.f32 2.0, %v916_v11 }
   0x6   :  { %v104_v22 = vadd.f32 %v72_v14, %v10_v2  ;;  %v105_v23 = vadd.f32 %v73_v15, %v11_v3  ;;  %v106_v24 = vadd.f32 %v74_v16, %v12_v6  ;;  %v78_v25 = vadd.f32 %v46_v17, %v12_v6 }
   0x7   :  { %v107_v26 = vadd.f32 %v75_v18, %v13_v7  ;;  %v108_v27 = vadd.f32 %v76_v19, %v911_v10  ;;  %v109_v28 = vadd.f32 %v77_v20, %v916_v11  ;;  %v79_v30 = vadd.f32 %v47_v21, %v13_v7 }
   0x8   :  { %v136_v31 = vmul.f32 0.25, %v104_v22  ;;  %v137_v32 = vmul.f32 0.25, %v105_v23  ;;  %v138_v33 = vmul.f32 0.25, %v106_v24  ;;  %v933_v35 = vadd.f32 %v78_v25, %v925_v29 }
   0x9   :  { %v139_v36 = vmul.f32 0.25, %v107_v26  ;;  %v140_v37 = vmul.f32 0.25, %v108_v27  ;;  %v935_v38 = vmul.f32 0.25, %v109_v28  ;;  %v938_v39 = vadd.f32 %v79_v30, %v930_v34 }
   0xa   :  { %v184_v40 = vrot.slane %v136_v31, 1  ;;  %v233_v41 = vrot.slane %v136_v31, 7  ;;  %v234_v42 = vrot.slane %v137_v32, 7  ;;  %v329_v43 = vrot.slane %v137_v32, 5 }
   0xb   :  { %v185_v44 = vrot.slane %v138_v33, 1  ;;  %v236_v45 = vrot.slane %v138_v33, 7  ;;  %v237_v46 = vrot.slane %v139_v36, 7  ;;  %v330_v47 = vrot.slane %v139_v36, 5 }
   0xc   :  { %v235_v48 = vsel %vm232_vm0, %v233_v41, %v234_v42  ;;  %v361_v49 = vsel %vm232_vm0, %v184_v40, %v233_v41  ;;  %v377_v50 = vsel %vm232_vm0, %v234_v42, %v329_v43  ;;  %v186_v51 = vrot.slane %v140_v37, 1 }
   0xd   :  { %v393_v52 = vmul.f32 2.0, %v361_v49  ;;  %v394_v53 = vmul.f32 2.0, %v235_v48  ;;  %v667_v54 = vrot.slane %v361_v49, 2  ;;  %v668_v55 = vrot.slane %v235_v48, 2 }
   0xe   :  { %v395_v56 = vmul.f32 2.0, %v377_v50  ;;  %v670_v57 = vrot.slane %v377_v50, 2  ;;  %v238_v58 = vsel %vm232_vm0, %v236_v45, %v237_v46  ;;  %v362_v59 = vsel %vm232_vm0, %v185_v44, %v236_v45 }
   0xf   :  { %v490_v60 = vrot.slane %v393_v52, 1  ;;  %v491_v61 = vrot.slane %v394_v53, 1  ;;  %v669_v62 = vsel %vm666_vm1, %v667_v54, %v668_v55  ;;  %v396_v63 = vmul.f32 2.0, %v362_v59 }
  0x10   :  { %v493_v0 = vrot.slane %v395_v56, 1  ;;  %v671_v1 = vsel %vm666_vm1, %v668_v55, %v670_v57  ;;  %v397_v2 = vmul.f32 2.0, %v238_v58  ;;  %v672_v3 = vrot.slane %v362_v59, 2 }
  0x11   :  { %v492_v4 = vsel %vm489_vm2, %v490_v60, %v491_v61  ;;  %v495_v5 = vrot.slane %v396_v63, 1  ;;  %v673_v6 = vrot.slane %v238_v58, 2  ;;  %v378_v7 = vsel %vm232_vm0, %v237_v46, %v330_v47 }
  0x12   :  { %v602_v8 = vadd.f32 %v492_v4, %v361_v49  ;;  %v494_v9 = vsel %vm489_vm2, %v491_v61, %v493_v0  ;;  %v496_v12 = vrot.slane %v397_v2, 1  ;;  %v398_v13 = vmul.f32 2.0, %v378_v7 }
  0x13   :  { %v603_v14 = vadd.f32 %v494_v9, %v235_v48  ;;  %v674_v15 = vsel %vm666_vm1, %v672_v3, %v673_v6  ;;  %v675_v16 = vrot.slane %v378_v7, 2  ;;  %v239_v17 = vrot.slane %v140_v37, 7 }
  0x14   :  { %v779_v18 = vadd.f32 %v669_v62, %v602_v8  ;;  %v497_v19 = vsel %vm489_vm2, %v495_v5, %v496_v12  ;;  %v498_v20 = vrot.slane %v398_v13, 1  ;;  %v240_v21 = vrot.slane %v935_v38, 7  ;;  %v18_v8 = vld [vmem:[%s1323_s0 + $0x50] sm:$0xff] }
  0x15   :  { %v780_v22 = vadd.f32 %v671_v1, %v603_v14  ;;  %v604_v23 = vadd.f32 %v497_v19, %v362_v59  ;;  %v676_v24 = vsel %vm666_vm1, %v673_v6, %v675_v16  ;;  %v363_v25 = vsel %vm232_vm0, %v186_v51, %v239_v17  ;;  %v19_v16 = vld [vmem:[%s1323_s0 + $0x58] sm:$0xff]  ;;  %v1002_v19 = vld [vmem:[%s1323_s0 + $0x60] sm:$0xff] }
  0x16   :  { %v811_v26 = vmul.f32 0.25, %v779_v18  ;;  %v499_v27 = vsel %vm489_vm2, %v496_v12, %v498_v20  ;;  %v241_v28 = vsel %vm232_vm0, %v239_v17, %v240_v21  ;;  %v399_v30 = vmul.f32 2.0, %v363_v25 }
  0x17   :  { %v812_v31 = vmul.f32 0.25, %v780_v22  ;;  %v781_v32 = vadd.f32 %v674_v15, %v604_v23  ;;  %v605_v33 = vadd.f32 %v499_v27, %v238_v58  ;;  %v400_v36 = vmul.f32 2.0, %v241_v28 }
  0x18   :  { %844 = vst.msk [vmem:[%s1324_s1] sm:$0xff] %vm843_vm3, %v811_v26  ;;  %v500_v37 = vrot.slane %v399_v30, 1  ;;  %v677_v40 = vrot.slane %v363_v25, 2  ;;  %v678_v41 = vrot.slane %v241_v28, 2  ;;  %v331_v42 = vrot.slane %v935_v38, 5 }
  0x19   :  { %845 = vst.msk [vmem:[%s1324_s1 + $0x8] sm:$0xff] %vm843_vm3, %v812_v31  ;;  %v813_v43 = vmul.f32 0.25, %v781_v32  ;;  %v782_v44 = vadd.f32 %v676_v24, %v605_v33  ;;  %v501_v45 = vrot.slane %v400_v36, 1  ;;  %v142_v46 = vmul.f32 0.25, %v933_v35 }
  0x1a   :  { %v679_v47 = vsel %vm666_vm1, %v677_v40, %v678_v41  ;;  %v379_v48 = vsel %vm232_vm0, %v240_v21, %v331_v42  ;;  %v143_v49 = vmul.f32 0.25, %v938_v39  ;;  %v48_v50 = vmul.f32 2.0, %v925_v29 }
  0x1b   :  { %846 = vst.msk [vmem:[%s1324_s1 + $0x10] sm:$0xff] %vm843_vm3, %v813_v43  ;;  %v814_v38 = vmul.f32 0.25, %v782_v44  ;;  %v502_v51 = vsel %vm489_vm2, %v500_v37, %v501_v45  ;;  %v401_v52 = vmul.f32 2.0, %v379_v48  ;;  %v680_v53 = vrot.slane %v379_v48, 2 }
  0x1c   :  { %v606_v54 = vadd.f32 %v502_v51, %v363_v25  ;;  %v187_v35 = vrot.slane %v142_v46, 1  ;;  %v242_v55 = vrot.slane %v142_v46, 7  ;;  %v243_v56 = vrot.slane %v143_v49, 7 }
  0x1d   :  { %847 = vst.msk [vmem:[%s1324_s1 + $0x18] sm:$0xff] %vm843_vm3, %v814_v38  ;;  %v503_v39 = vrot.slane %v401_v52, 1  ;;  %v681_v57 = vsel %vm666_vm1, %v678_v41, %v680_v53  ;;  %v332_v58 = vrot.slane %v143_v49, 5  ;;  %v49_v59 = vmul.f32 2.0, %v930_v34 }
  0x1e   :  { %v783_v60 = vadd.f32 %v679_v47, %v606_v54  ;;  %v244_v61 = vsel %vm232_vm0, %v242_v55, %v243_v56  ;;  %v364_v62 = vsel %vm232_vm0, %v187_v35, %v242_v55  ;;  %v80_v63 = vadd.f32 %v48_v50, %v911_v10 }
  0x1f   :  { %v504_v0 = vsel %vm489_vm2, %v501_v45, %v503_v39  ;;  %v402_v1 = vmul.f32 2.0, %v364_v62  ;;  %v403_v2 = vmul.f32 2.0, %v244_v61  ;;  %v682_v3 = vrot.slane %v364_v62, 2 }
  0x20   :  { %v815_v4 = vmul.f32 0.25, %v783_v60  ;;  %v607_v5 = vadd.f32 %v504_v0, %v241_v28  ;;  %v683_v6 = vrot.slane %v244_v61, 2  ;;  %v380_v7 = vsel %vm232_vm0, %v243_v56, %v332_v58 }
  0x21   :  { %v505_v9 = vrot.slane %v402_v1, 1  ;;  %v506_v12 = vrot.slane %v403_v2, 1  ;;  %v404_v13 = vmul.f32 2.0, %v380_v7  ;;  %v685_v14 = vrot.slane %v380_v7, 2 }
  0x22   :  { %848 = vst.msk [vmem:[%s1324_s1 + $0x20] sm:$0xff] %vm843_vm3, %v815_v4  ;;  %v784_v10 = vadd.f32 %v681_v57, %v607_v5  ;;  %v684_v15 = vsel %vm666_vm1, %v682_v3, %v683_v6  ;;  %v81_v17 = vadd.f32 %v49_v59, %v916_v11  ;;  %v112_v18 = vadd.f32 %v80_v63, %v18_v8  ;;  %v1009_v11 = vld [vmem:[%s1323_s0 + $0x68] sm:$0xff]  ;;  %v1038_v3 = vld [vmem:[%s1323_s0 + $0x70] sm:$0xff] }
  0x23   :  { %v507_v20 = vsel %vm489_vm2, %v505_v9, %v506_v12  ;;  %v508_v21 = vrot.slane %v404_v13, 1  ;;  %v686_v22 = vsel %vm666_vm1, %v683_v6, %v685_v14  ;;  %v50_v23 = vmul.f32 2.0, %v18_v8 }
  0x24   :  { %v816_v24 = vmul.f32 0.25, %v784_v10  ;;  %v608_v25 = vadd.f32 %v507_v20, %v364_v62  ;;  %v113_v26 = vadd.f32 %v81_v17, %v19_v16  ;;  %v144_v27 = vmul.f32 0.25, %v112_v18 }
  0x25   :  { %v509_v28 = vsel %vm489_vm2, %v506_v12, %v508_v21  ;;  %v51_v30 = vmul.f32 2.0, %v19_v16  ;;  %v82_v31 = vadd.f32 %v50_v23, %v925_v29  ;;  %v52_v32 = vmul.f32 2.0, %v1002_v19  ;;  %v23_v23 = vld [vmem:[%s1323_s0 + $0x78] sm:$0xff] }
  0x26   :  { %849 = vst.msk [vmem:[%s1324_s1 + $0x28] sm:$0xff] %vm843_vm3, %v816_v24  ;;  %v785_v33 = vadd.f32 %v684_v15, %v608_v25  ;;  %v609_v36 = vadd.f32 %v509_v28, %v244_v61  ;;  %v145_v37 = vmul.f32 0.25, %v113_v26  ;;  %v188_v40 = vrot.slane %v144_v27, 1 }
  0x27   :  { %v245_v41 = vrot.slane %v144_v27, 7  ;;  %v83_v42 = vadd.f32 %v51_v30, %v930_v34  ;;  %v114_v43 = vadd.f32 %v82_v31, %v1002_v19  ;;  %v53_v44 = vmul.f32 2.0, %v1009_v11 }
  0x28   :  { %v817_v45 = vmul.f32 0.25, %v785_v33  ;;  %v786_v29 = vadd.f32 %v686_v22, %v609_v36  ;;  %v246_v46 = vrot.slane %v145_v37, 7  ;;  %v333_v47 = vrot.slane %v145_v37, 5 }
  0x29   :  { %v365_v48 = vsel %vm232_vm0, %v188_v40, %v245_v41  ;;  %v115_v49 = vadd.f32 %v83_v42, %v1009_v11  ;;  %v146_v50 = vmul.f32 0.25, %v114_v43  ;;  %v84_v38 = vadd.f32 %v52_v32, %v18_v8 }
  0x2a   :  { %850 = vst.msk [vmem:[%s1324_s1 + $0x30] sm:$0xff] %vm843_vm3, %v817_v45  ;;  %v818_v34 = vmul.f32 0.25, %v786_v29  ;;  %v247_v51 = vsel %vm232_vm0, %v245_v41, %v246_v46  ;;  %v405_v52 = vmul.f32 2.0, %v365_v48  ;;  %v687_v53 = vrot.slane %v365_v48, 2  ;;  %v1055_v41 = vld [vmem:[%s1323_s0 + $0x80] sm:$0xff] }
  0x2b   :  { %v406_v54 = vmul.f32 2.0, %v247_v51  ;;  %v688_v35 = vrot.slane %v247_v51, 2  ;;  %v381_v55 = vsel %vm232_vm0, %v246_v46, %v333_v47  ;;  %v147_v56 = vmul.f32 0.25, %v115_v49 }
  0x2c   :  { %851 = vst.msk [vmem:[%s1324_s1 + $0x38] sm:$0xff] %vm843_vm3, %v818_v34  ;;  %v510_v39 = vrot.slane %v405_v52, 1  ;;  %v407_v57 = vmul.f32 2.0, %v381_v55  ;;  %v690_v58 = vrot.slane %v381_v55, 2  ;;  %v189_v59 = vrot.slane %v146_v50, 1 }
  0x2d   :  { %v511_v60 = vrot.slane %v406_v54, 1  ;;  %v689_v61 = vsel %vm666_vm1, %v687_v53, %v688_v35  ;;  %v248_v62 = vrot.slane %v146_v50, 7  ;;  %v249_v63 = vrot.slane %v147_v56, 7 }
  0x2e   :  { %v513_v0 = vrot.slane %v407_v57, 1  ;;  %v691_v1 = vsel %vm666_vm1, %v688_v35, %v690_v58  ;;  %v334_v2 = vrot.slane %v147_v56, 5  ;;  %v85_v4 = vadd.f32 %v53_v44, %v19_v16  ;;  %v1075_v57 = vld [vmem:[%s1323_s0 + $0x88] sm:$0xff] }
  0x2f   :  { %v512_v5 = vsel %vm489_vm2, %v510_v39, %v511_v60  ;;  %v250_v6 = vsel %vm232_vm0, %v248_v62, %v249_v63  ;;  %v366_v7 = vsel %vm232_vm0, %v189_v59, %v248_v62  ;;  %v116_v8 = vadd.f32 %v84_v38, %v1038_v3 }
  0x30   :  { %v610_v9 = vadd.f32 %v512_v5, %v365_v48  ;;  %v514_v12 = vsel %vm489_vm2, %v511_v60, %v513_v0  ;;  %v408_v13 = vmul.f32 2.0, %v366_v7  ;;  %v409_v14 = vmul.f32 2.0, %v250_v6 }
  0x31   :  { %v611_v10 = vadd.f32 %v514_v12, %v247_v51  ;;  %v692_v15 = vrot.slane %v366_v7, 2  ;;  %v693_v17 = vrot.slane %v250_v6, 2  ;;  %v382_v18 = vsel %vm232_vm0, %v249_v63, %v334_v2 }
  0x32   :  { %v787_v20 = vadd.f32 %v689_v61, %v610_v9  ;;  %v515_v16 = vrot.slane %v408_v13, 1  ;;  %v516_v21 = vrot.slane %v409_v14, 1  ;;  %v410_v22 = vmul.f32 2.0, %v382_v18  ;;  %v1084_v61 = vld [vmem:[%s1323_s0 + $0x90] sm:$0xff] }
  0x33   :  { %v788_v24 = vadd.f32 %v691_v1, %v611_v10  ;;  %v694_v25 = vsel %vm666_vm1, %v692_v15, %v693_v17  ;;  %v695_v26 = vrot.slane %v382_v18, 2  ;;  %v117_v27 = vadd.f32 %v85_v4, %v23_v23 }
  0x34   :  { %v819_v28 = vmul.f32 0.25, %v787_v20  ;;  %v517_v30 = vsel %vm489_vm2, %v515_v16, %v516_v21  ;;  %v518_v31 = vrot.slane %v410_v22, 1  ;;  %v148_v32 = vmul.f32 0.25, %v116_v8 }
  0x35   :  { %v820_v33 = vmul.f32 0.25, %v788_v24  ;;  %v612_v36 = vadd.f32 %v517_v30, %v366_v7  ;;  %v696_v37 = vsel %vm666_vm1, %v693_v17, %v695_v26  ;;  %v149_v40 = vmul.f32 0.25, %v117_v27 }
  0x36   :  { %852 = vst.msk [vmem:[%s1324_s1 + $0x40] sm:$0xff] %vm843_vm3, %v819_v28  ;;  %v519_v42 = vsel %vm489_vm2, %v516_v21, %v518_v31  ;;  %v190_v43 = vrot.slane %v148_v32, 1  ;;  %v251_v44 = vrot.slane %v148_v32, 7  ;;  %v54_v45 = vmul.f32 2.0, %v1038_v3 }
  0x37   :  { %853 = vst.msk [vmem:[%s1324_s1 + $0x48] sm:$0xff] %vm843_vm3, %v820_v33  ;;  %v789_v29 = vadd.f32 %v694_v25, %v612_v36  ;;  %v613_v46 = vadd.f32 %v519_v42, %v250_v6  ;;  %v252_v47 = vrot.slane %v149_v40, 7  ;;  %v335_v48 = vrot.slane %v149_v40, 5 }
  0x38   :  { %v367_v49 = vsel %vm232_vm0, %v190_v43, %v251_v44  ;;  %v55_v50 = vmul.f32 2.0, %v23_v23  ;;  %v86_v38 = vadd.f32 %v54_v45, %v1002_v19  ;;  %v56_v34 = vmul.f32 2.0, %v1055_v41 }
  0x39   :  { %v821_v51 = vmul.f32 0.25, %v789_v29  ;;  %v790_v52 = vadd.f32 %v696_v37, %v613_v46  ;;  %v253_v53 = vsel %vm232_vm0, %v251_v44, %v252_v47  ;;  %v411_v54 = vmul.f32 2.0, %v367_v49 }
  0x3a   :  { %v412_v35 = vmul.f32 2.0, %v253_v53  ;;  %v697_v55 = vrot.slane %v367_v49, 2  ;;  %v698_v56 = vrot.slane %v253_v53, 2  ;;  %v383_v39 = vsel %vm232_vm0, %v252_v47, %v335_v48 }
  0x3b   :  { %854 = vst.msk [vmem:[%s1324_s1 + $0x50] sm:$0xff] %vm843_vm3, %v821_v51  ;;  %v822_v19 = vmul.f32 0.25, %v790_v52  ;;  %v520_v58 = vrot.slane %v411_v54, 1  ;;  %v413_v59 = vmul.f32 2.0, %v383_v39  ;;  %v700_v60 = vrot.slane %v383_v39, 2 }
  0x3c   :  { %v521_v62 = vrot.slane %v412_v35, 1  ;;  %v699_v63 = vsel %vm666_vm1, %v697_v55, %v698_v56  ;;  %v87_v0 = vadd.f32 %v55_v50, %v1009_v11  ;;  %v118_v1 = vadd.f32 %v86_v38, %v1055_v41  ;;  %v1101_v11 = vld [vmem:[%s1323_s0 + $0x98] sm:$0xff] }
  0x3d   :  { %855 = vst.msk [vmem:[%s1324_s1 + $0x58] sm:$0xff] %vm843_vm3, %v822_v19  ;;  %v523_v2 = vrot.slane %v413_v59, 1  ;;  %v701_v4 = vsel %vm666_vm1, %v698_v56, %v700_v60  ;;  %v57_v5 = vmul.f32 2.0, %v1075_v57  ;;  %v88_v6 = vadd.f32 %v56_v34, %v1038_v3 }
  0x3e   :  { %v522_v7 = vsel %vm489_vm2, %v520_v58, %v521_v62  ;;  %v119_v8 = vadd.f32 %v87_v0, %v1075_v57  ;;  %v150_v9 = vmul.f32 0.25, %v118_v1  ;;  %v58_v12 = vmul.f32 2.0, %v1084_v61 }
  0x3f   :  { %v614_v13 = vadd.f32 %v522_v7, %v367_v49  ;;  %v524_v14 = vsel %vm489_vm2, %v521_v62, %v523_v2  ;;  %v89_v10 = vadd.f32 %v57_v5, %v23_v23  ;;  %v120_v15 = vadd.f32 %v88_v6, %v1084_v61  ;;  %v28_v5 = vld [vmem:[%s1323_s0 + $0xa0] sm:$0xff]  ;;  %v29_v6 = vld [vmem:[%s1323_s0 + $0xa8] sm:$0xff] }
  0x40   :  { %v615_v17 = vadd.f32 %v524_v14, %v253_v53  ;;  %v151_v3 = vmul.f32 0.25, %v119_v8  ;;  %v191_v18 = vrot.slane %v150_v9, 1  ;;  %v254_v20 = vrot.slane %v150_v9, 7  ;;  %v1140_v14 = vld [vmem:[%s1323_s0 + $0xb0] sm:$0xff] }
  0x41   :  { %v791_v16 = vadd.f32 %v699_v63, %v614_v13  ;;  %v121_v21 = vadd.f32 %v89_v10, %v1101_v11  ;;  %v152_v22 = vmul.f32 0.25, %v120_v15  ;;  %v59_v24 = vmul.f32 2.0, %v1101_v11 }
  0x42   :  { %v792_v25 = vadd.f32 %v701_v4, %v615_v17  ;;  %v255_v26 = vrot.slane %v151_v3, 7  ;;  %v368_v27 = vsel %vm232_vm0, %v191_v18, %v254_v20  ;;  %v336_v28 = vrot.slane %v151_v3, 5 }
  0x43   :  { %v823_v30 = vmul.f32 0.25, %v791_v16  ;;  %v414_v31 = vmul.f32 2.0, %v368_v27  ;;  %v702_v23 = vrot.slane %v368_v27, 2  ;;  %v153_v32 = vmul.f32 0.25, %v121_v21 }
  0x44   :  { %v824_v33 = vmul.f32 0.25, %v792_v25  ;;  %v256_v36 = vsel %vm232_vm0, %v254_v20, %v255_v26  ;;  %v384_v37 = vsel %vm232_vm0, %v255_v26, %v336_v28  ;;  %v192_v40 = vrot.slane %v152_v22, 1  ;;  %v1154_v25 = vld [vmem:[%s1323_s0 + $0xb8] sm:$0xff] }
  0x45   :  { %856 = vst.msk [vmem:[%s1324_s1 + $0x60] sm:$0xff] %vm843_vm3, %v823_v30  ;;  %v415_v42 = vmul.f32 2.0, %v256_v36  ;;  %v525_v43 = vrot.slane %v414_v31, 1  ;;  %v703_v44 = vrot.slane %v256_v36, 2  ;;  %v416_v45 = vmul.f32 2.0, %v384_v37 }
  0x46   :  { %857 = vst.msk [vmem:[%s1324_s1 + $0x68] sm:$0xff] %vm843_vm3, %v824_v33  ;;  %v705_v29 = vrot.slane %v384_v37, 2  ;;  %v257_v46 = vrot.slane %v152_v22, 7  ;;  %v258_v47 = vrot.slane %v153_v32, 7  ;;  %v337_v48 = vrot.slane %v153_v32, 5 }
  0x47   :  { %v526_v49 = vrot.slane %v415_v42, 1  ;;  %v704_v50 = vsel %vm666_vm1, %v702_v23, %v703_v44  ;;  %v528_v38 = vrot.slane %v416_v45, 1  ;;  %v90_v34 = vadd.f32 %v58_v12, %v1055_v41 }
  0x48   :  { %v706_v51 = vsel %vm666_vm1, %v703_v44, %v705_v29  ;;  %v259_v52 = vsel %vm232_vm0, %v257_v46, %v258_v47  ;;  %v369_v53 = vsel %vm232_vm0, %v192_v40, %v257_v46  ;;  %v385_v54 = vsel %vm232_vm0, %v258_v47, %v337_v48 }
  0x49   :  { %v527_v35 = vsel %vm489_vm2, %v525_v43, %v526_v49  ;;  %v529_v55 = vsel %vm489_vm2, %v526_v49, %v528_v38  ;;  %v417_v56 = vmul.f32 2.0, %v369_v53  ;;  %v418_v39 = vmul.f32 2.0, %v259_v52 }
  0x4a   :  { %v616_v19 = vadd.f32 %v527_v35, %v368_v27  ;;  %v617_v58 = vadd.f32 %v529_v55, %v256_v36  ;;  %v707_v59 = vrot.slane %v369_v53, 2  ;;  %v708_v60 = vrot.slane %v259_v52, 2 }
  0x4b   :  { %v530_v62 = vrot.slane %v417_v56, 1  ;;  %v531_v41 = vrot.slane %v418_v39, 1  ;;  %v419_v63 = vmul.f32 2.0, %v385_v54  ;;  %v710_v0 = vrot.slane %v385_v54, 2 }
  0x4c   :  { %v793_v1 = vadd.f32 %v704_v50, %v616_v19  ;;  %v794_v2 = vadd.f32 %v706_v51, %v617_v58  ;;  %v709_v4 = vsel %vm666_vm1, %v707_v59, %v708_v60  ;;  %v91_v7 = vadd.f32 %v59_v24, %v1075_v57 }
  0x4d   :  { %v532_v8 = vsel %vm489_vm2, %v530_v62, %v531_v41  ;;  %v533_v9 = vrot.slane %v419_v63, 1  ;;  %v711_v12 = vsel %vm666_vm1, %v708_v60, %v710_v0  ;;  %v122_v13 = vadd.f32 %v90_v34, %v28_v5 }
  0x4e   :  { %v825_v10 = vmul.f32 0.25, %v793_v1  ;;  %v826_v15 = vmul.f32 0.25, %v794_v2  ;;  %v618_v17 = vadd.f32 %v532_v8, %v369_v53  ;;  %v123_v3 = vadd.f32 %v91_v7, %v29_v6  ;;  %v32_v8 = vld [vmem:[%s1323_s0 + $0xc0] sm:$0xff] }
  0x4f   :  { %v534_v18 = vsel %vm489_vm2, %v531_v41, %v533_v9  ;;  %v154_v20 = vmul.f32 0.25, %v122_v13  ;;  %v60_v16 = vmul.f32 2.0, %v28_v5  ;;  %v61_v57 = vmul.f32 2.0, %v29_v6 }
  0x50   :  { %858 = vst.msk [vmem:[%s1324_s1 + $0x70] sm:$0xff] %vm843_vm3, %v825_v10  ;;  %859 = vst.msk [vmem:[%s1324_s1 + $0x78] sm:$0xff] %vm843_vm3, %v826_v15  ;;  %v795_v21 = vadd.f32 %v709_v4, %v618_v17  ;;  %v619_v22 = vadd.f32 %v534_v18, %v259_v52  ;;  %v155_v24 = vmul.f32 0.25, %v123_v3  ;;  %v62_v26 = vmul.f32 2.0, %v1140_v14  ;;  %v33_v3 = vld [vmem:[%s1323_s0 + $0xc8] sm:$0xff] }
  0x51   :  { %v193_v27 = vrot.slane %v154_v20, 1  ;;  %v260_v28 = vrot.slane %v154_v20, 7  ;;  %v92_v30 = vadd.f32 %v60_v16, %v1084_v61  ;;  %v93_v31 = vadd.f32 %v61_v57, %v1101_v11 }
  0x52   :  { %v827_v23 = vmul.f32 0.25, %v795_v21  ;;  %v796_v32 = vadd.f32 %v711_v12, %v619_v22  ;;  %v261_v33 = vrot.slane %v155_v24, 7  ;;  %v338_v36 = vrot.slane %v155_v24, 5 }
  0x53   :  { %v370_v37 = vsel %vm232_vm0, %v193_v27, %v260_v28  ;;  %v124_v40 = vadd.f32 %v92_v30, %v1140_v14  ;;  %v125_v42 = vadd.f32 %v93_v31, %v1154_v25  ;;  %v63_v43 = vmul.f32 2.0, %v1154_v25 }
  0x54   :  { %860 = vst.msk [vmem:[%s1324_s1 + $0x80] sm:$0xff] %vm843_vm3, %v827_v23  ;;  %v828_v61 = vmul.f32 0.25, %v796_v32  ;;  %v262_v11 = vsel %vm232_vm0, %v260_v28, %v261_v33  ;;  %v420_v44 = vmul.f32 2.0, %v370_v37  ;;  %v712_v45 = vrot.slane %v370_v37, 2  ;;  %v1196_v23 = vld [vmem:[%s1323_s0 + $0xd0] sm:$0xff] }
  0x55   :  { %v421_v29 = vmul.f32 2.0, %v262_v11  ;;  %v713_v46 = vrot.slane %v262_v11, 2  ;;  %v386_v47 = vsel %vm232_vm0, %v261_v33, %v338_v36  ;;  %v156_v48 = vmul.f32 0.25, %v124_v40 }
  0x56   :  { %861 = vst.msk [vmem:[%s1324_s1 + $0x88] sm:$0xff] %vm843_vm3, %v828_v61  ;;  %v535_v49 = vrot.slane %v420_v44, 1  ;;  %v422_v50 = vmul.f32 2.0, %v386_v47  ;;  %v715_v38 = vrot.slane %v386_v47, 2  ;;  %v157_v34 = vmul.f32 0.25, %v125_v42 }
  0x57   :  { %v536_v51 = vrot.slane %v421_v29, 1  ;;  %v714_v52 = vsel %vm666_vm1, %v712_v45, %v713_v46  ;;  %v194_v53 = vrot.slane %v156_v48, 1  ;;  %v263_v54 = vrot.slane %v156_v48, 7 }
  0x58   :  { %v538_v35 = vrot.slane %v422_v50, 1  ;;  %v716_v55 = vsel %vm666_vm1, %v713_v46, %v715_v38  ;;  %v264_v56 = vrot.slane %v157_v34, 7  ;;  %v339_v39 = vrot.slane %v157_v34, 5 }
  0x59   :  { %v537_v19 = vsel %vm489_vm2, %v535_v49, %v536_v51  ;;  %v371_v58 = vsel %vm232_vm0, %v194_v53, %v263_v54  ;;  %v94_v59 = vadd.f32 %v62_v26, %v28_v5  ;;  %v95_v60 = vadd.f32 %v63_v43, %v29_v6 }
  0x5a   :  { %v620_v62 = vadd.f32 %v537_v19, %v370_v37  ;;  %v539_v41 = vsel %vm489_vm2, %v536_v51, %v538_v35  ;;  %v265_v63 = vsel %vm232_vm0, %v263_v54, %v264_v56  ;;  %v423_v0 = vmul.f32 2.0, %v371_v58  ;;  %v1213_v51 = vld [vmem:[%s1323_s0 + $0xd8] sm:$0xff] }
  0x5b   :  { %v621_v1 = vadd.f32 %v539_v41, %v262_v11  ;;  %v424_v2 = vmul.f32 2.0, %v265_v63  ;;  %v717_v4 = vrot.slane %v371_v58, 2  ;;  %v718_v7 = vrot.slane %v265_v63, 2 }
  0x5c   :  { %v797_v9 = vadd.f32 %v714_v52, %v620_v62  ;;  %v540_v12 = vrot.slane %v423_v0, 1  ;;  %v387_v13 = vsel %vm232_vm0, %v264_v56, %v339_v39  ;;  %v126_v5 = vadd.f32 %v94_v59, %v32_v8 }
  0x5d   :  { %v798_v6 = vadd.f32 %v716_v55, %v621_v1  ;;  %v541_v10 = vrot.slane %v424_v2, 1  ;;  %v719_v15 = vsel %vm666_vm1, %v717_v4, %v718_v7  ;;  %v425_v17 = vmul.f32 2.0, %v387_v13  ;;  %v1231_v1 = vld [vmem:[%s1323_s0 + $0xe0] sm:$0xff] }
  0x5e   :  { %v829_v18 = vmul.f32 0.25, %v797_v9  ;;  %v720_v20 = vrot.slane %v387_v13, 2  ;;  %v127_v16 = vadd.f32 %v95_v60, %v33_v3  ;;  %v158_v57 = vmul.f32 0.25, %v126_v5 }
  0x5f   :  { %v830_v21 = vmul.f32 0.25, %v798_v6  ;;  %v542_v22 = vsel %vm489_vm2, %v540_v12, %v541_v10  ;;  %v543_v24 = vrot.slane %v425_v17, 1  ;;  %v64_v26 = vmul.f32 2.0, %v32_v8  ;;  %v1239_v6 = vld [vmem:[%s1323_s0 + $0xe8] sm:$0xff] }
  0x60   :  { %862 = vst.msk [vmem:[%s1324_s1 + $0x90] sm:$0xff] %vm843_vm3, %v829_v18  ;;  %v622_v27 = vadd.f32 %v542_v22, %v371_v58  ;;  %v721_v28 = vsel %vm666_vm1, %v718_v7, %v720_v20  ;;  %v159_v30 = vmul.f32 0.25, %v127_v16  ;;  %v195_v31 = vrot.slane %v158_v57, 1 }
  0x61   :  { %863 = vst.msk [vmem:[%s1324_s1 + $0x98] sm:$0xff] %vm843_vm3, %v830_v21  ;;  %v544_v32 = vsel %vm489_vm2, %v541_v10, %v543_v24  ;;  %v266_v33 = vrot.slane %v158_v57, 7  ;;  %v65_v36 = vmul.f32 2.0, %v33_v3  ;;  %v96_v37 = vadd.f32 %v64_v26, %v1140_v14 }
  0x62   :  { %v799_v40 = vadd.f32 %v719_v15, %v622_v27  ;;  %v623_v42 = vadd.f32 %v544_v32, %v265_v63  ;;  %v267_v43 = vrot.slane %v159_v30, 7  ;;  %v340_v61 = vrot.slane %v159_v30, 5 }
  0x63   :  { %v372_v11 = vsel %vm232_vm0, %v195_v31, %v266_v33  ;;  %v97_v44 = vadd.f32 %v65_v36, %v1154_v25  ;;  %v128_v45 = vadd.f32 %v96_v37, %v1196_v23  ;;  %v66_v29 = vmul.f32 2.0, %v1196_v23 }
  0x64   :  { %v831_v46 = vmul.f32 0.25, %v799_v40  ;;  %v800_v47 = vadd.f32 %v721_v28, %v623_v42  ;;  %v268_v48 = vsel %vm232_vm0, %v266_v33, %v267_v43  ;;  %v426_v49 = vmul.f32 2.0, %v372_v11 }
  0x65   :  { %v427_v50 = vmul.f32 2.0, %v268_v48  ;;  %v722_v38 = vrot.slane %v372_v11, 2  ;;  %v723_v14 = vrot.slane %v268_v48, 2  ;;  %v388_v34 = vsel %vm232_vm0, %v267_v43, %v340_v61 }
  0x66   :  { %864 = vst.msk [vmem:[%s1324_s1 + $0xa0] sm:$0xff] %vm843_vm3, %v831_v46  ;;  %v832_v25 = vmul.f32 0.25, %v800_v47  ;;  %v545_v52 = vrot.slane %v426_v49, 1  ;;  %v428_v53 = vmul.f32 2.0, %v388_v34  ;;  %v725_v54 = vrot.slane %v388_v34, 2 }
  0x67   :  { %v546_v35 = vrot.slane %v427_v50, 1  ;;  %v724_v55 = vsel %vm666_vm1, %v722_v38, %v723_v14  ;;  %v129_v56 = vadd.f32 %v97_v44, %v1213_v51  ;;  %v160_v39 = vmul.f32 0.25, %v128_v45  ;;  %v38_v45 = vld [vmem:[%s1323_s0 + $0xf0] sm:$0xff] }
  0x68   :  { %865 = vst.msk [vmem:[%s1324_s1 + $0xa8] sm:$0xff] %vm843_vm3, %v832_v25  ;;  %v548_v19 = vrot.slane %v428_v53, 1  ;;  %v726_v58 = vsel %vm666_vm1, %v723_v14, %v725_v54  ;;  %v67_v59 = vmul.f32 2.0, %v1213_v51  ;;  %v98_v60 = vadd.f32 %v66_v29, %v32_v8 }
  0x69   :  { %v547_v62 = vsel %vm489_vm2, %v545_v52, %v546_v35  ;;  %v161_v41 = vmul.f32 0.25, %v129_v56  ;;  %v196_v63 = vrot.slane %v160_v39, 1  ;;  %v269_v0 = vrot.slane %v160_v39, 7  ;;  %v39_v52 = vld [vmem:[%s1323_s0 + $0xf8] sm:$0xff] }
  0x6a   :  { %v624_v2 = vadd.f32 %v547_v62, %v372_v11  ;;  %v549_v4 = vsel %vm489_vm2, %v546_v35, %v548_v19  ;;  %v99_v7 = vadd.f32 %v67_v59, %v33_v3  ;;  %v130_v9 = vadd.f32 %v98_v60, %v1231_v1 }
  0x6b   :  { %v625_v12 = vadd.f32 %v549_v4, %v268_v48  ;;  %v270_v13 = vrot.slane %v161_v41, 7  ;;  %v373_v8 = vsel %vm232_vm0, %v196_v63, %v269_v0  ;;  %v341_v5 = vrot.slane %v161_v41, 5 }
  0x6c   :  { %v801_v10 = vadd.f32 %v724_v55, %v624_v2  ;;  %v429_v15 = vmul.f32 2.0, %v373_v8  ;;  %v727_v17 = vrot.slane %v373_v8, 2  ;;  %v131_v18 = vadd.f32 %v99_v7, %v1239_v6 }
  0x6d   :  { %v802_v20 = vadd.f32 %v726_v58, %v625_v12  ;;  %v271_v3 = vsel %vm232_vm0, %v269_v0, %v270_v13  ;;  %v389_v16 = vsel %vm232_vm0, %v270_v13, %v341_v5  ;;  %v162_v57 = vmul.f32 0.25, %v130_v9 }
  0x6e   :  { %v833_v21 = vmul.f32 0.25, %v801_v10  ;;  %v430_v22 = vmul.f32 2.0, %v271_v3  ;;  %v550_v24 = vrot.slane %v429_v15, 1  ;;  %v728_v26 = vrot.slane %v271_v3, 2 }
  0x6f   :  { %v834_v27 = vmul.f32 0.25, %v802_v20  ;;  %v431_v28 = vmul.f32 2.0, %v389_v16  ;;  %v730_v30 = vrot.slane %v389_v16, 2  ;;  %v163_v31 = vmul.f32 0.25, %v131_v18 }
  0x70   :  { %866 = vst.msk [vmem:[%s1324_s1 + $0xb0] sm:$0xff] %vm843_vm3, %v833_v21  ;;  %v551_v32 = vrot.slane %v430_v22, 1  ;;  %v729_v33 = vsel %vm666_vm1, %v727_v17, %v728_v26  ;;  %v197_v36 = vrot.slane %v162_v57, 1  ;;  %v272_v37 = vrot.slane %v162_v57, 7 }
  0x71   :  { %867 = vst.msk [vmem:[%s1324_s1 + $0xb8] sm:$0xff] %vm843_vm3, %v834_v27  ;;  %v553_v40 = vrot.slane %v431_v28, 1  ;;  %v731_v42 = vsel %vm666_vm1, %v728_v26, %v730_v30  ;;  %v273_v43 = vrot.slane %v163_v31, 7  ;;  %v342_v61 = vrot.slane %v163_v31, 5 }
  0x72   :  { %v552_v11 = vsel %vm489_vm2, %v550_v24, %v551_v32  ;;  %v374_v44 = vsel %vm232_vm0, %v197_v36, %v272_v37  ;;  %v68_v29 = vmul.f32 2.0, %v1231_v1  ;;  %v69_v46 = vmul.f32 2.0, %v1239_v6 }
  0x73   :  { %v626_v47 = vadd.f32 %v552_v11, %v373_v8  ;;  %v554_v48 = vsel %vm489_vm2, %v551_v32, %v553_v40  ;;  %v274_v49 = vsel %vm232_vm0, %v272_v37, %v273_v43  ;;  %v432_v50 = vmul.f32 2.0, %v374_v44 }
  0x74   :  { %v627_v38 = vadd.f32 %v554_v48, %v271_v3  ;;  %v433_v14 = vmul.f32 2.0, %v274_v49  ;;  %v732_v34 = vrot.slane %v374_v44, 2  ;;  %v733_v25 = vrot.slane %v274_v49, 2 }
  0x75   :  { %v803_v53 = vadd.f32 %v729_v33, %v626_v47  ;;  %v555_v54 = vrot.slane %v432_v50, 1  ;;  %v390_v35 = vsel %vm232_vm0, %v273_v43, %v342_v61  ;;  %v70_v55 = vmul.f32 2.0, %v38_v45 }
  0x76   :  { %v804_v56 = vadd.f32 %v731_v42, %v627_v38  ;;  %v556_v39 = vrot.slane %v433_v14, 1  ;;  %v734_v19 = vsel %vm666_vm1, %v732_v34, %v733_v25  ;;  %v434_v58 = vmul.f32 2.0, %v390_v35 }
  0x77   :  { %v835_v59 = vmul.f32 0.25, %v803_v53  ;;  %v735_v60 = vrot.slane %v390_v35, 2  ;;  %v71_v62 = vmul.f32 2.0, %v39_v52  ;;  %v100_v41 = vadd.f32 %v68_v29, %v1196_v23 }
  0x78   :  { %v836_v63 = vmul.f32 0.25, %v804_v56  ;;  %v557_v0 = vsel %vm489_vm2, %v555_v54, %v556_v39  ;;  %v558_v2 = vrot.slane %v434_v58, 1  ;;  %v101_v4 = vadd.f32 %v69_v46, %v1213_v51 }
  0x79   :  { %868 = vst.msk [vmem:[%s1324_s1 + $0xc0] sm:$0xff] %vm843_vm3, %v835_v59  ;;  %v628_v7 = vadd.f32 %v557_v0, %v374_v44  ;;  %v132_v9 = vadd.f32 %v100_v41, %v38_v45  ;;  %v102_v12 = vadd.f32 %v70_v55, %v1231_v1  ;;  %v736_v13 = vsel %vm666_vm1, %v733_v25, %v735_v60 }
  0x7a   :  { %869 = vst.msk [vmem:[%s1324_s1 + $0xc8] sm:$0xff] %vm843_vm3, %v836_v63  ;;  %v559_v23 = vsel %vm489_vm2, %v556_v39, %v558_v2  ;;  %v133_v8 = vadd.f32 %v101_v4, %v39_v52  ;;  %v103_v51 = vadd.f32 %v71_v62, %v1239_v6 }
  0x7b   :  { %v805_v5 = vadd.f32 %v734_v19, %v628_v7  ;;  %v629_v10 = vadd.f32 %v559_v23, %v274_v49  ;;  %v164_v15 = vmul.f32 0.25, %v132_v9  ;;  %v134_v17 = vadd.f32 %v102_v12, %v1231_v1 }
  0x7c   :  { %v165_v18 = vmul.f32 0.25, %v133_v8  ;;  %v135_v20 = vadd.f32 %v103_v51, %v1239_v6 }
  0x7d   :  { %v837_v3 = vmul.f32 0.25, %v805_v5  ;;  %v806_v16 = vadd.f32 %v736_v13, %v629_v10  ;;  %v198_v57 = vrot.slane %v164_v15, 1  ;;  %v275_v21 = vrot.slane %v164_v15, 7 }
  0x7e   :  { %v276_v22 = vrot.slane %v165_v18, 7  ;;  %v343_v24 = vrot.slane %v165_v18, 5  ;;  %v166_v26 = vmul.f32 0.25, %v134_v17  ;;  %v167_v27 = vmul.f32 0.25, %v135_v20 }
  0x7f   :  { %870 = vst.msk [vmem:[%s1324_s1 + $0xd0] sm:$0xff] %vm843_vm3, %v837_v3  ;;  %v838_v28 = vmul.f32 0.25, %v806_v16  ;;  %v375_v30 = vsel %vm232_vm0, %v198_v57, %v275_v21 }
  0x80   :  { %v277_v1 = vsel %vm232_vm0, %v275_v21, %v276_v22  ;;  %v435_v31 = vmul.f32 2.0, %v375_v30  ;;  %v737_v6 = vrot.slane %v375_v30, 2  ;;  %v391_v32 = vsel %vm232_vm0, %v276_v22, %v343_v24 }
  0x81   :  { %871 = vst.msk [vmem:[%s1324_s1 + $0xd8] sm:$0xff] %vm843_vm3, %v838_v28  ;;  %v436_v33 = vmul.f32 2.0, %v277_v1  ;;  %v738_v36 = vrot.slane %v277_v1, 2  ;;  %v437_v37 = vmul.f32 2.0, %v391_v32  ;;  %v740_v40 = vrot.slane %v391_v32, 2 }
  0x82   :  { %v560_v42 = vrot.slane %v435_v31, 1  ;;  %v199_v43 = vrot.slane %v166_v26, 1  ;;  %v278_v61 = vrot.slane %v166_v26, 7  ;;  %v279_v11 = vrot.slane %v167_v27, 7 }
  0x83   :  { %v561_v44 = vrot.slane %v436_v33, 1  ;;  %v739_v45 = vsel %vm666_vm1, %v737_v6, %v738_v36  ;;  %v563_v29 = vrot.slane %v437_v37, 1  ;;  %v741_v46 = vsel %vm666_vm1, %v738_v36, %v740_v40 }
  0x84   :  { %v280_v47 = vsel %vm232_vm0, %v278_v61, %v279_v11  ;;  %v376_v48 = vsel %vm232_vm0, %v199_v43, %v278_v61  ;;  %v344_v49 = vrot.slane %v167_v27, 5 }
  0x85   :  { %v562_v50 = vsel %vm489_vm2, %v560_v42, %v561_v44  ;;  %v564_v38 = vsel %vm489_vm2, %v561_v44, %v563_v29  ;;  %v438_v14 = vmul.f32 2.0, %v376_v48  ;;  %v439_v34 = vmul.f32 2.0, %v280_v47 }
  0x86   :  { %v630_v25 = vadd.f32 %v562_v50, %v375_v30  ;;  %v631_v52 = vadd.f32 %v564_v38, %v277_v1  ;;  %v742_v53 = vrot.slane %v376_v48, 2  ;;  %v743_v54 = vrot.slane %v280_v47, 2 }
  0x87   :  { %v565_v35 = vrot.slane %v438_v14, 1  ;;  %v566_v55 = vrot.slane %v439_v34, 1  ;;  %v392_v56 = vsel %vm232_vm0, %v279_v11, %v344_v49 }
  0x88   :  { %v807_v39 = vadd.f32 %v739_v45, %v630_v25  ;;  %v808_v19 = vadd.f32 %v741_v46, %v631_v52  ;;  %v440_v58 = vmul.f32 2.0, %v392_v56  ;;  %v744_v60 = vsel %vm666_vm1, %v742_v53, %v743_v54 }
  0x89   :  { %v567_v59 = vsel %vm489_vm2, %v565_v35, %v566_v55  ;;  %v745_v62 = vrot.slane %v392_v56, 2 }
  0x8a   :  { %v839_v41 = vmul.f32 0.25, %v807_v39  ;;  %v840_v63 = vmul.f32 0.25, %v808_v19  ;;  %v632_v0 = vadd.f32 %v567_v59, %v376_v48  ;;  %v568_v2 = vrot.slane %v440_v58, 1 }
  0x8b   :  { %v746_v9 = vsel %vm666_vm1, %v743_v54, %v745_v62 }
  0x8c   :  { %872 = vst.msk [vmem:[%s1324_s1 + $0xe0] sm:$0xff] %vm843_vm3, %v839_v41  ;;  %873 = vst.msk [vmem:[%s1324_s1 + $0xe8] sm:$0xff] %vm843_vm3, %v840_v63  ;;  %v809_v4 = vadd.f32 %v744_v60, %v632_v0  ;;  %v569_v7 = vsel %vm489_vm2, %v566_v55, %v568_v2 }
  0x8d   :  { %v633_v12 = vadd.f32 %v569_v7, %v280_v47 }
  0x8e   :  { %v841_v23 = vmul.f32 0.25, %v809_v4 }
  0x8f   :  { %v810_v13 = vadd.f32 %v746_v9, %v633_v12 }
  0x90   :  { %874 = vst.msk [vmem:[%s1324_s1 + $0xf0] sm:$0xff] %vm843_vm3, %v841_v23 }
  0x91   :  { %v842_v8 = vmul.f32 0.25, %v810_v13 }
  0x93   :  { %875 = vst.msk [vmem:[%s1324_s1 + $0xf8] sm:$0xff] %vm843_vm3, %v842_v8 }

</bundles_post_ra>
